<compile_context>
chip_gen: v5e
topology: v5e:2x2
jax: 0.10.0
libtpu: 0.0.40
codegen_flags: <defaults>
</compile_context>

<pallas_src>
import jax
import jax.numpy as jnp
from jax.experimental import pallas as pl
from jax.experimental.pallas import tpu as pltpu


def _round_up(x: int, m: int) -> int:
    return (x + m - 1) // m * m


def classifier_kernel(x_ref, w1_ref, b1_ref, w2_ref, b2_ref, o_ref):
    """Per batch tile: out = ReLU(x @ W1 + b1) @ W2 + b2 (MXU accumulates f32)."""
    x = x_ref[...]
    w1 = w1_ref[...]
    w2 = w2_ref[...]

    # Opt-in bf16 fast path: weights stored in bf16 -> feed the MXU bf16
    # operands (4x throughput on v5e/v6e/v7x), keep f32 accumulation.
    if w1.dtype == jnp.bfloat16 and x.dtype != jnp.bfloat16:
        x = x.astype(jnp.bfloat16)

    h = jnp.dot(x, w1, preferred_element_type=jnp.float32)
    h = jnp.maximum(h + b1_ref[...].astype(jnp.float32), 0.0)   # bias bcast + ReLU on VPU
    if w2.dtype == jnp.bfloat16:
        h = h.astype(jnp.bfloat16)

    out = jnp.dot(h, w2, preferred_element_type=jnp.float32)
    o_ref[...] = (out + b2_ref[...].astype(jnp.float32)).astype(o_ref.dtype)


def classifier_forward(x, w1, b1, w2, b2, *, tile_b: int = 512):
    """x: [B, d_in]; w1: [d_in, d_in]; b1: [d_in]|[1,d_in]; w2: [d_in, d_out]; b2: [d_out]|[1,d_out].

    Weights are stored pre-transposed ([in, out]) so the kernel computes x @ W.
    Pass bf16 weights (cast once at init) to opt into the bf16 MXU path.
    """
    B, d_in = x.shape
    d_out = w2.shape[1]

    # Biases as (1, d) rows for VMEM blocks (metadata-only reshape).
    if b1.ndim == 1:
        b1 = b1.reshape(1, d_in)
    if b2.ndim == 1:
        b2 = b2.reshape(1, d_out)

    # ---- batch tile selection ---------------------------------------------
    # Sublane-aligned (8), as large as the batch allows (amortizes per-step
    # overhead), but split into >= 2 grid steps when possible so v7x's two
    # TensorCores both get work on the "parallel" axis.
    if B <= 8:
        tile_b = B                      # block == full array dim is legal
    else:
        tile_b = max(8, _round_up(min(tile_b, B), 8))
        if pl.cdiv(B, tile_b) < 2:
            tile_b = max(8, _round_up(pl.cdiv(B, 2), 8))
    num_tiles = pl.cdiv(B, tile_b)      # last tile may be partial; rows are independent

    # ---- scheduler hints ----------------------------------------------------
    x_bytes = jnp.dtype(x.dtype).itemsize
    w_bytes = jnp.dtype(w1.dtype).itemsize
    b_bytes = jnp.dtype(b1.dtype).itemsize
    flops = 2 * B * d_in * d_in + 2 * B * d_in * d_out
    bytes_accessed = (
        B * d_in * x_bytes
        + (d_in * d_in + d_in * d_out) * w_bytes
        + (d_in + d_out) * b_bytes
        + B * d_out * x_bytes
    )
    cost = pl.CostEstimate(flops=flops, transcendentals=0,
                           bytes_accessed=bytes_accessed)

    # ---- VMEM budget (true requirement, never clamped below it) -------------
    # Constant-index weight/bias blocks are still double-buffered by default,
    # and the f32 intermediate h / pre-cast result live in VMEM too.
    weight_resident = (d_in * d_in + d_in * d_out) * w_bytes + (d_in + d_out) * b_bytes
    vmem_bytes = (
        2 * tile_b * d_in * x_bytes      # streamed x tile, double-buffered
        + 2 * tile_b * d_out * x_bytes   # streamed out tile, double-buffered
        + 2 * weight_resident            # weights/biases (default 2x buffering)
        + tile_b * d_in * 4              # f32 intermediate h
        + tile_b * d_out * 4             # f32 result before cast
    )
    vmem_bytes = min(max(vmem_bytes + (2 << 20), 16 << 20), 128 << 20)

    return pl.pallas_call(
        classifier_kernel,
        out_shape=jax.ShapeDtypeStruct((B, d_out), x.dtype),
        grid_spec=pltpu.PrefetchScalarGridSpec(
            num_scalar_prefetch=0,
            grid=(num_tiles,),
            in_specs=[
                # Activations stream per batch tile.
                pl.BlockSpec((tile_b, d_in), lambda i: (i, 0)),
                # Weights / biases: constant index_map -> fetched once, stay resident.
                pl.BlockSpec((d_in, d_in), lambda i: (0, 0)),
                pl.BlockSpec((1, d_in), lambda i: (0, 0)),
                pl.BlockSpec((d_in, d_out), lambda i: (0, 0)),
                pl.BlockSpec((1, d_out), lambda i: (0, 0)),
            ],
            out_specs=pl.BlockSpec((tile_b, d_out), lambda i: (i, 0)),
        ),
        compiler_params=pltpu.CompilerParams(
            dimension_semantics=("parallel",),   # megacore sharding on v7x
            vmem_limit_bytes=vmem_bytes,
        ),
        cost_estimate=cost,
    )(x, w1, b1, w2, b2)


def init_params(key, d_in, d_out, dtype=jnp.float32):
    """Deterministic init matching nn.Linear's U(-1/sqrt(fan_in), 1/sqrt(fan_in)).

    Weights are stored pre-transposed as [in, out]; biases pre-shaped (1, d) so
    the per-call path does zero preparation work.
    """
    k1, k2, k3, k4 = jax.random.split(key, 4)
    bound1 = 1.0 / (d_in ** 0.5)
    w1 = jax.random.uniform(k1, (d_in, d_in), dtype, -bound1, bound1)
    b1 = jax.random.uniform(k2, (1, d_in), dtype, -bound1, bound1)
    w2 = jax.random.uniform(k3, (d_in, d_out), dtype, -bound1, bound1)
    b2 = jax.random.uniform(k4, (1, d_out), dtype, -bound1, bound1)
    return w1, b1, w2, b2


if __name__ == "__main__":
    key = jax.random.PRNGKey(0)
    kx, kp = jax.random.split(key)

    # Small shapes consistent with the module; batch big enough to exercise the
    # tiled, pipelined, two-grid-step (both-TensorCore) path.
    B, d_in, d_out = 256, 32, 16
    x = jax.random.normal(kx, (B, d_in), jnp.float32)
    w1, b1, w2, b2 = init_params(kp, d_in, d_out)

    fwd = jax.jit(classifier_forward)

    # f32 path (bit-matches the PyTorch f32 reference up to accumulation order).
    out = jax.block_until_ready(fwd(x, w1, b1, w2, b2))
    ref = jnp.maximum(x @ w1 + b1, 0.0) @ w2 + b2
    assert out.shape == (B, d_out)
    assert jnp.allclose(out, ref, atol=1e-5, rtol=1e-5)

    # Opt-in bf16 MXU path: weights cast ONCE outside the per-call path.
    w1_bf16, w2_bf16 = w1.astype(jnp.bfloat16), w2.astype(jnp.bfloat16)
    out_bf16 = jax.block_until_ready(fwd(x, w1_bf16, b1, w2_bf16, b2))
    assert jnp.allclose(out_bf16, ref, atol=5e-2, rtol=5e-2)

    print("KERNEL_OK")
</pallas_src>

<mosaic_0001>
module attributes {stable_mosaic.version = 11 : i64} {
  func.func @classifier_kernel(%arg0: i32, %arg1: memref<128x32xf32, #tpu.memory_space<vmem>>, %arg2: memref<32x32xf32, #tpu.memory_space<vmem>>, %arg3: memref<1x32xf32, #tpu.memory_space<vmem>>, %arg4: memref<32x16xf32, #tpu.memory_space<vmem>>, %arg5: memref<1x16xf32, #tpu.memory_space<vmem>>, %arg6: memref<128x16xf32, #tpu.memory_space<vmem>>) attributes {dimension_semantics = [#tpu.dimension_semantics<parallel>], iteration_bounds = array<i64: 2>, scalar_prefetch = 0 : i64, scratch_operands = 0 : i64, tpu.core_type = #tpu.core_type<tc>, window_params = [{transform_indices = @transform_0, window_bounds = array<i64: 128, 32>}, {pipeline_mode = #tpu.pipeline_mode<synchronous>, transform_indices = @transform_1, window_bounds = array<i64: 32, 32>}, {pipeline_mode = #tpu.pipeline_mode<synchronous>, transform_indices = @transform_2, window_bounds = array<i64: 1, 32>}, {pipeline_mode = #tpu.pipeline_mode<synchronous>, transform_indices = @transform_3, window_bounds = array<i64: 32, 16>}, {pipeline_mode = #tpu.pipeline_mode<synchronous>, transform_indices = @transform_4, window_bounds = array<i64: 1, 16>}, {transform_indices = @transform_5, window_bounds = array<i64: 128, 16>}]} {
    %c0 = arith.constant 0 : index
    %c0_0 = arith.constant 0 : index
    %0 = vector.load %arg1[%c0, %c0_0] : memref<128x32xf32, #tpu.memory_space<vmem>>, vector<128x32xf32>
    %c0_1 = arith.constant 0 : index
    %c0_2 = arith.constant 0 : index
    %1 = vector.load %arg2[%c0_1, %c0_2] : memref<32x32xf32, #tpu.memory_space<vmem>>, vector<32x32xf32>
    %c0_3 = arith.constant 0 : index
    %c0_4 = arith.constant 0 : index
    %2 = vector.load %arg4[%c0_3, %c0_4] : memref<32x16xf32, #tpu.memory_space<vmem>>, vector<32x16xf32>
    %cst = arith.constant dense<0.000000e+00> : vector<128x32xf32>
    %3 = tpu.matmul %0, %1, %cst {dimension_numbers = #tpu.dot_dimension_numbers<[1], [0], [0], [1], [0, 0, 1, 1], [], []>} : vector<128x32xf32>, vector<32x32xf32>, vector<128x32xf32> -> vector<128x32xf32>
    %c0_5 = arith.constant 0 : index
    %c0_6 = arith.constant 0 : index
    %4 = vector.load %arg3[%c0_5, %c0_6] : memref<1x32xf32, #tpu.memory_space<vmem>>, vector<1x32xf32>
    %5 = vector.broadcast %4 : vector<1x32xf32> to vector<128x32xf32>
    %6 = arith.addf %3, %5 : vector<128x32xf32>
    %cst_7 = arith.constant 0.000000e+00 : f32
    %7 = vector.broadcast %cst_7 : f32 to vector<128x32xf32>
    %8 = arith.maximumf %6, %7 : vector<128x32xf32>
    %cst_8 = arith.constant dense<0.000000e+00> : vector<128x16xf32>
    %9 = tpu.matmul %8, %2, %cst_8 {dimension_numbers = #tpu.dot_dimension_numbers<[1], [0], [0], [1], [0, 0, 1, 1], [], []>} : vector<128x32xf32>, vector<32x16xf32>, vector<128x16xf32> -> vector<128x16xf32>
    %c0_9 = arith.constant 0 : index
    %c0_10 = arith.constant 0 : index
    %10 = vector.load %arg5[%c0_9, %c0_10] : memref<1x16xf32, #tpu.memory_space<vmem>>, vector<1x16xf32>
    %11 = vector.broadcast %10 : vector<1x16xf32> to vector<128x16xf32>
    %12 = arith.addf %9, %11 : vector<128x16xf32>
    %c0_11 = arith.constant 0 : index
    %c0_12 = arith.constant 0 : index
    %13 = vector.load %arg6[%c0_11, %c0_12] : memref<128x16xf32, #tpu.memory_space<vmem>>, vector<128x16xf32>
    tpu.vector_store %arg6[%c0_11, %c0_12], %12 {strides = array<i32>} : memref<128x16xf32, #tpu.memory_space<vmem>>, vector<128x16xf32>,
    return
  }
  func.func @transform_0(%arg0: i32) -> (i32, i32) {
    %c0_i32 = arith.constant 0 : i32
    %c0_i32_0 = arith.constant 0 : i32
    return %arg0, %c0_i32 : i32, i32
  }
  func.func @transform_1(%arg0: i32) -> (i32, i32) {
    %c0_i32 = arith.constant 0 : i32
    %c0_i32_0 = arith.constant 0 : i32
    %c0_i32_1 = arith.constant 0 : i32
    return %c0_i32, %c0_i32_0 : i32, i32
  }
  func.func @transform_2(%arg0: i32) -> (i32, i32) {
    %c0_i32 = arith.constant 0 : i32
    %c0_i32_0 = arith.constant 0 : i32
    %c0_i32_1 = arith.constant 0 : i32
    return %c0_i32, %c0_i32_0 : i32, i32
  }
  func.func @transform_3(%arg0: i32) -> (i32, i32) {
    %c0_i32 = arith.constant 0 : i32
    %c0_i32_0 = arith.constant 0 : i32
    %c0_i32_1 = arith.constant 0 : i32
    return %c0_i32, %c0_i32_0 : i32, i32
  }
  func.func @transform_4(%arg0: i32) -> (i32, i32) {
    %c0_i32 = arith.constant 0 : i32
    %c0_i32_0 = arith.constant 0 : i32
    %c0_i32_1 = arith.constant 0 : i32
    return %c0_i32, %c0_i32_0 : i32, i32
  }
  func.func @transform_5(%arg0: i32) -> (i32, i32) {
    %c0_i32 = arith.constant 0 : i32
    %c0_i32_0 = arith.constant 0 : i32
    return %arg0, %c0_i32 : i32, i32
  }
}

</mosaic_0001>

<bundles_post_ra>
// kernel: classifier_forward.1
= control target key start
LH: loop header
LB: loop body
LE: loop exit
PB: predicated region body
PF: predicated region fallthrough
CT: control target
= control target key end

     0   :  { %s675_s18 = smov 0   ;;  %s813_s0 = inlined_call_operand.vmem [shape: f32[256,32], index: 0, kind: input, shape index: {}]   ;;  %s814_s1 = inlined_call_operand.vmem [shape: f32[32,32], index: 1, kind: input, shape index: {}]   ;;  %s815_s2 = inlined_call_operand.vmem [shape: f32[1,32], index: 2, kind: input, shape index: {}]   ;;  %s816_s3 = inlined_call_operand.vmem [shape: f32[32,16], index: 3, kind: input, shape index: {}]   ;;  %s817_s4 = inlined_call_operand.vmem [shape: f32[1,16], index: 4, kind: input, shape index: {}]   ;;  %s818_s5 = inlined_call_operand.vmem [shape: f32[256,16], index: 5, kind: output, shape index: {}]  }
   0x1 LB: > { %s576_s19 = sadd.s32 4294967295, %s643_s18   ;;  %p580_p0 = scmp.ge.s32.totalorder %s643_s18, 1  ;;  %s643_s18 = sphi %s675_s18, %s15_s18  }
   0x2   : > { %p188_p1 = scmp.lt.s32.totalorder %s643_s18, 3 }
   0x4   : > { %p189_p2 = pnand %p580_p0, %p188_p1 }
   0x5   : > { %s581_s24 = sshll.u32 (!%p189_p2), %s576_s19, 4 }
   0x6   : > { %192 = sbr.rel (%p189_p2) target bundleno = 346 (0x15a), region = 40  ;;  %p217_p3 = scmp.lt.s32.totalorder (!%p189_p2), %s581_s24, 31 }
   0xb   : > { %v247_v0 = vld [vmem:[%s814_s1 + $0x18] sm:$0xff]  ;;  %v246_v1 = vld [vmem:[%s814_s1 + $0x10] sm:$0xff]  ;;  %v245_v2 = vld [vmem:[%s814_s1 + $0x8] sm:$0xff]  ;;  %s820_s24 = smov (!%p217_p3, %s581_s24), 31  ;;  %vm256_vm0 = vcmask 261120   ;;  %vm503_vm1 = vcmask 130048  }
   0xc   : > { %619 = vmatpush.msra.mxu2 %v247_v0  ;;  %317 = vmatpush.msra.mxu0 %v247_v0  ;;  %v244_v3 = vld [vmem:[%s814_s1] sm:$0xff]  ;;  %s582_s29 = sshll.u32 %s820_s24, 3  ;;  %v251_v12 = vld [vmem:[%s816_s3 + $0x18] sm:$0xff]  ;;  %v250_v21 = vld [vmem:[%s816_s3 + $0x10] sm:$0xff] }
   0xd   : > { %s703_s7 = scalar_lea.vmem %s813_s0, %s582_s29  ;;  %623 = vmatpush.msra.mxu3 %v251_v12  ;;  %450 = vmatpush.msra.mxu1 %v251_v12  ;;  %v249_v22 = vld [vmem:[%s816_s3 + $0x8] sm:$0xff]  ;;  %v248_v23 = vld [vmem:[%s816_s3] sm:$0xff]  ;;  %s776_s23 = scalar_lea.vmem %s818_s5, %s582_s29 }
   0xe   : > { %620 = vmatpush.msra.mxu2 %v246_v1  ;;  %318 = vmatpush.msra.mxu0 %v246_v1  ;;  %v236_v4 = vld [vmem:[%s703_s7 + $0x40] sm:$0xff]  ;;  %v237_v6 = vld [vmem:[%s703_s7 + $0x48] sm:$0xff]  ;;  %v238_v8 = vld [vmem:[%s703_s7 + $0x50] sm:$0xff] }
   0xf   : > { %v228_v5 = vld [vmem:[%s703_s7] sm:$0xff]  ;;  %v229_v7 = vld [vmem:[%s703_s7 + $0x8] sm:$0xff]  ;;  %v230_v9 = vld [vmem:[%s703_s7 + $0x10] sm:$0xff]  ;;  %624 = vmatpush.msra.mxu3 %v250_v21  ;;  %451 = vmatpush.msra.mxu1 %v250_v21 }
  0x10   : > { %621 = vmatpush.msra.mxu2 %v245_v2  ;;  %319 = vmatpush.msra.mxu0 %v245_v2  ;;  %v239_v10 = vld [vmem:[%s703_s7 + $0x58] sm:$0xff]  ;;  %v240_v13 = vld [vmem:[%s703_s7 + $0x60] sm:$0xff]  ;;  %v241_v15 = vld [vmem:[%s703_s7 + $0x68] sm:$0xff] }
  0x11   : > { %v231_v11 = vld [vmem:[%s703_s7 + $0x18] sm:$0xff]  ;;  %v232_v14 = vld [vmem:[%s703_s7 + $0x20] sm:$0xff]  ;;  %v233_v16 = vld [vmem:[%s703_s7 + $0x28] sm:$0xff]  ;;  %625 = vmatpush.msra.mxu3 %v249_v22  ;;  %452 = vmatpush.msra.mxu1 %v249_v22 }
  0x12   : > { %622 = vmatpush.msra.mxu2 %v244_v3  ;;  %320 = vmatpush.msra.mxu0 %v244_v3  ;;  %v242_v17 = vld [vmem:[%s703_s7 + $0x70] sm:$0xff]  ;;  %v243_v19 = vld [vmem:[%s703_s7 + $0x78] sm:$0xff]  ;;  %v635_v24 = vld [vmem:[%s815_s2] ss:$0 sm:$0xff] }
  0x13   : > { %593 = vmatmul.msk.f32.vlgmr.msra.gmra.mxu2 %vm256_vm0, %v236_v4  ;;  %585 = vmatmul.msk.f32.vlgmr.msra.gmra.mxu0 %vm256_vm0, %v228_v5  ;;  %v234_v18 = vld [vmem:[%s703_s7 + $0x30] sm:$0xff]  ;;  %v235_v20 = vld [vmem:[%s703_s7 + $0x38] sm:$0xff] }
  0x14   : > { %626 = vmatpush.msra.mxu3 %v248_v23  ;;  %453 = vmatpush.msra.mxu1 %v248_v23 }
  0x1b   : > { %594 = vmatmul.msk.f32.gmra.mxu2 %vm256_vm0, %v237_v6  ;;  %586 = vmatmul.msk.f32.gmra.mxu0 %vm256_vm0, %v229_v7 }
  0x23   : > { %595 = vmatmul.msk.f32.gmra.mxu2 %vm256_vm0, %v238_v8  ;;  %587 = vmatmul.msk.f32.gmra.mxu0 %vm256_vm0, %v230_v9  ;;  %v636_v9 = vld [vmem:[%s817_s4] ss:$0 sm:$0xff] }
  0x2b   : > { %596 = vmatmul.msk.f32.gmra.mxu2 %vm256_vm0, %v239_v10  ;;  %588 = vmatmul.msk.f32.gmra.mxu0 %vm256_vm0, %v231_v11 }
  0x33   : > { %597 = vmatmul.msk.f32.gmra.mxu2 %vm256_vm0, %v240_v13  ;;  %589 = vmatmul.msk.f32.gmra.mxu0 %vm256_vm0, %v232_v14 }
  0x3b   : > { %598 = vmatmul.msk.f32.gmra.mxu2 %vm256_vm0, %v241_v15  ;;  %590 = vmatmul.msk.f32.gmra.mxu0 %vm256_vm0, %v233_v16 }
  0x43   : > { %599 = vmatmul.msk.f32.gmra.mxu2 %vm256_vm0, %v242_v17  ;;  %591 = vmatmul.msk.f32.gmra.mxu0 %vm256_vm0, %v234_v18 }
  0x4b   : > { %600 = vmatmul.msk.f32.gmra.mxu2 %vm256_vm0, %v243_v19  ;;  %592 = vmatmul.msk.f32.gmra.mxu0 %vm256_vm0, %v235_v20 }
  0x90   : > { %v322_v25 = vpop.f32.mrf.mxu0 }
  0x91   : > { %v323_v26 = vadd.f32 %v635_v24, %v322_v25 }
  0x93   : > { %v370_v27 = vmax.f32 %v323_v26, 0.0 }
  0x95   : > { %601 = vmatmul.msk.f32.vlgmr.msra.gmra.mxu1 %vm256_vm0, %v370_v27 }
  0x96   : > { %v346_v28 = vpop.f32.mrf.mxu2 }
  0x97   : > { %v347_v29 = vadd.f32 %v635_v24, %v346_v28 }
  0x98   : > { %v325_v30 = vpop.f32.mrf.mxu0 }
  0x99   : > { %v378_v31 = vmax.f32 %v347_v29, 0.0  ;;  %v326_v32 = vadd.f32 %v635_v24, %v325_v30 }
  0x9b   : > { %609 = vmatmul.msk.f32.vlgmr.msra.gmra.mxu3 %vm256_vm0, %v378_v31  ;;  %v371_v33 = vmax.f32 %v326_v32, 0.0 }
  0x9d   : > { %602 = vmatmul.msk.f32.gmra.mxu1 %vm256_vm0, %v371_v33 }
  0x9e   : > { %v349_v34 = vpop.f32.mrf.mxu2 }
  0x9f   : > { %v350_v35 = vadd.f32 %v635_v24, %v349_v34 }
  0xa0   : > { %v328_v36 = vpop.f32.mrf.mxu0 }
  0xa1   : > { %v379_v37 = vmax.f32 %v350_v35, 0.0  ;;  %v329_v38 = vadd.f32 %v635_v24, %v328_v36 }
  0xa3   : > { %610 = vmatmul.msk.f32.gmra.mxu3 %vm256_vm0, %v379_v37  ;;  %v372_v39 = vmax.f32 %v329_v38, 0.0 }
  0xa5   : > { %603 = vmatmul.msk.f32.gmra.mxu1 %vm256_vm0, %v372_v39 }
  0xa6   : > { %v352_v40 = vpop.f32.mrf.mxu2 }
  0xa7   : > { %v353_v41 = vadd.f32 %v635_v24, %v352_v40 }
  0xa8   : > { %v331_v42 = vpop.f32.mrf.mxu0 }
  0xa9   : > { %v380_v43 = vmax.f32 %v353_v41, 0.0  ;;  %v332_v44 = vadd.f32 %v635_v24, %v331_v42 }
  0xab   : > { %611 = vmatmul.msk.f32.gmra.mxu3 %vm256_vm0, %v380_v43  ;;  %v373_v45 = vmax.f32 %v332_v44, 0.0 }
  0xad   : > { %604 = vmatmul.msk.f32.gmra.mxu1 %vm256_vm0, %v373_v45 }
  0xae   : > { %v355_v46 = vpop.f32.mrf.mxu2 }
  0xaf   : > { %v356_v47 = vadd.f32 %v635_v24, %v355_v46 }
  0xb0   : > { %v334_v48 = vpop.f32.mrf.mxu0 }
  0xb1   : > { %v381_v49 = vmax.f32 %v356_v47, 0.0  ;;  %v335_v50 = vadd.f32 %v635_v24, %v334_v48 }
  0xb3   : > { %612 = vmatmul.msk.f32.gmra.mxu3 %vm256_vm0, %v381_v49  ;;  %v374_v51 = vmax.f32 %v335_v50, 0.0 }
  0xb5   : > { %605 = vmatmul.msk.f32.gmra.mxu1 %vm256_vm0, %v374_v51 }
  0xb6   : > { %v358_v52 = vpop.f32.mrf.mxu2 }
  0xb7   : > { %v359_v53 = vadd.f32 %v635_v24, %v358_v52 }
  0xb8   : > { %v337_v54 = vpop.f32.mrf.mxu0 }
  0xb9   : > { %v382_v55 = vmax.f32 %v359_v53, 0.0  ;;  %v338_v56 = vadd.f32 %v635_v24, %v337_v54 }
  0xbb   : > { %613 = vmatmul.msk.f32.gmra.mxu3 %vm256_vm0, %v382_v55  ;;  %v375_v57 = vmax.f32 %v338_v56, 0.0 }
  0xbd   : > { %606 = vmatmul.msk.f32.gmra.mxu1 %vm256_vm0, %v375_v57 }
  0xbe   : > { %v361_v58 = vpop.f32.mrf.mxu2 }
  0xbf   : > { %v362_v59 = vadd.f32 %v635_v24, %v361_v58 }
  0xc0   : > { %v340_v60 = vpop.f32.mrf.mxu0 }
  0xc1   : > { %v383_v61 = vmax.f32 %v362_v59, 0.0  ;;  %v341_v62 = vadd.f32 %v635_v24, %v340_v60 }
  0xc3   : > { %614 = vmatmul.msk.f32.gmra.mxu3 %vm256_vm0, %v383_v61  ;;  %v376_v63 = vmax.f32 %v341_v62, 0.0 }
  0xc5   : > { %607 = vmatmul.msk.f32.gmra.mxu1 %vm256_vm0, %v376_v63 }
  0xc6   : > { %v364_v0 = vpop.f32.mrf.mxu2 }
  0xc7   : > { %v365_v1 = vadd.f32 %v635_v24, %v364_v0 }
  0xc8   : > { %v343_v2 = vpop.f32.mrf.mxu0 }
  0xc9   : > { %v384_v3 = vmax.f32 %v365_v1, 0.0  ;;  %v344_v4 = vadd.f32 %v635_v24, %v343_v2 }
  0xcb   : > { %615 = vmatmul.msk.f32.gmra.mxu3 %vm256_vm0, %v384_v3  ;;  %v377_v5 = vmax.f32 %v344_v4, 0.0 }
  0xcd   : > { %608 = vmatmul.msk.f32.gmra.mxu1 %vm256_vm0, %v377_v5 }
  0xce   : > { %v367_v6 = vpop.f32.mrf.mxu2 }
  0xcf   : > { %v368_v7 = vadd.f32 %v635_v24, %v367_v6 }
  0xd1   : > { %v385_v8 = vmax.f32 %v368_v7, 0.0 }
  0xd3   : > { %616 = vmatmul.msk.f32.gmra.mxu3 %vm256_vm0, %v385_v8 }
 0x112   : > { %v455_v10 = vpop.f32.mrf.mxu1 }
 0x113   : > { %v456_v11 = vadd.f32 %v636_v9, %v455_v10 }
 0x115   : > { %504 = vst.msk [vmem:[%s776_s23] sm:$0xff] %vm503_vm1, %v456_v11 }
 0x11a   : > { %v458_v12 = vpop.f32.mrf.mxu1 }
 0x11b   : > { %v459_v13 = vadd.f32 %v636_v9, %v458_v12 }
 0x11d   : > { %505 = vst.msk [vmem:[%s776_s23 + $0x8] sm:$0xff] %vm503_vm1, %v459_v13 }
 0x11e   : > { %v479_v14 = vpop.f32.mrf.mxu3 }
 0x11f   : > { %v480_v15 = vadd.f32 %v636_v9, %v479_v14 }
 0x121   : > { %512 = vst.msk [vmem:[%s776_s23 + $0x40] sm:$0xff] %vm503_vm1, %v480_v15 }
 0x122   : > { %v461_v16 = vpop.f32.mrf.mxu1 }
 0x123   : > { %v462_v17 = vadd.f32 %v636_v9, %v461_v16 }
 0x125   : > { %506 = vst.msk [vmem:[%s776_s23 + $0x10] sm:$0xff] %vm503_vm1, %v462_v17 }
 0x126   : > { %v482_v18 = vpop.f32.mrf.mxu3 }
 0x127   : > { %v483_v19 = vadd.f32 %v636_v9, %v482_v18 }
 0x129   : > { %513 = vst.msk [vmem:[%s776_s23 + $0x48] sm:$0xff] %vm503_vm1, %v483_v19 }
 0x12a   : > { %v464_v20 = vpop.f32.mrf.mxu1 }
 0x12b   : > { %v465_v21 = vadd.f32 %v636_v9, %v464_v20 }
 0x12d   : > { %507 = vst.msk [vmem:[%s776_s23 + $0x18] sm:$0xff] %vm503_vm1, %v465_v21 }
 0x12e   : > { %v485_v22 = vpop.f32.mrf.mxu3 }
 0x12f   : > { %v486_v23 = vadd.f32 %v636_v9, %v485_v22 }
 0x131   : > { %514 = vst.msk [vmem:[%s776_s23 + $0x50] sm:$0xff] %vm503_vm1, %v486_v23 }
 0x132   : > { %v467_v24 = vpop.f32.mrf.mxu1 }
 0x133   : > { %v468_v25 = vadd.f32 %v636_v9, %v467_v24 }
 0x135   : > { %508 = vst.msk [vmem:[%s776_s23 + $0x20] sm:$0xff] %vm503_vm1, %v468_v25 }
 0x136   : > { %v488_v26 = vpop.f32.mrf.mxu3 }
 0x137   : > { %v489_v27 = vadd.f32 %v636_v9, %v488_v26 }
 0x139   : > { %515 = vst.msk [vmem:[%s776_s23 + $0x58] sm:$0xff] %vm503_vm1, %v489_v27 }
 0x13a   : > { %v470_v28 = vpop.f32.mrf.mxu1 }
 0x13b   : > { %v471_v29 = vadd.f32 %v636_v9, %v470_v28 }
 0x13d   : > { %509 = vst.msk [vmem:[%s776_s23 + $0x28] sm:$0xff] %vm503_vm1, %v471_v29 }
 0x13e   : > { %v491_v30 = vpop.f32.mrf.mxu3 }
 0x13f   : > { %v492_v31 = vadd.f32 %v636_v9, %v491_v30 }
 0x141   : > { %516 = vst.msk [vmem:[%s776_s23 + $0x60] sm:$0xff] %vm503_vm1, %v492_v31 }
 0x142   : > { %v473_v32 = vpop.f32.mrf.mxu1 }
 0x143   : > { %v474_v33 = vadd.f32 %v636_v9, %v473_v32 }
 0x145   : > { %510 = vst.msk [vmem:[%s776_s23 + $0x30] sm:$0xff] %vm503_vm1, %v474_v33 }
 0x146   : > { %v494_v34 = vpop.f32.mrf.mxu3 }
 0x147   : > { %v495_v35 = vadd.f32 %v636_v9, %v494_v34 }
 0x149   : > { %517 = vst.msk [vmem:[%s776_s23 + $0x68] sm:$0xff] %vm503_vm1, %v495_v35 }
 0x14a   : > { %v476_v36 = vpop.f32.mrf.mxu1 }
 0x14b   : > { %v477_v37 = vadd.f32 %v636_v9, %v476_v36 }
 0x14d   : > { %511 = vst.msk [vmem:[%s776_s23 + $0x38] sm:$0xff] %vm503_vm1, %v477_v37 }
 0x14e   : > { %v497_v38 = vpop.f32.mrf.mxu3 }
 0x14f   : > { %v498_v39 = vadd.f32 %v636_v9, %v497_v38 }
 0x151   : > { %518 = vst.msk [vmem:[%s776_s23 + $0x70] sm:$0xff] %vm503_vm1, %v498_v39 }
 0x156   : > { %v500_v40 = vpop.f32.mrf.mxu3 }
 0x157   : > { %v501_v41 = vadd.f32 %v636_v9, %v500_v40 }
 0x159   : > { %519 = vst.msk [vmem:[%s776_s23 + $0x78] sm:$0xff] %vm503_vm1, %v501_v41 }
 0x15a PF: > { %s15_s18 = sadd.s32 1, %s643_s18  }
 0x15b   : > { %p12_p4 = scmp.ge.s32.totalorder %s15_s18, 4  }
 0x15d   :  { %14 = sbr.rel (!%p12_p4) target bundleno = 1 (0x1), region = 70 }

</bundles_post_ra>
